<compile_context>
chip_gen: v6e
topology: v6e:2x2x1
jax: 0.10.0
libtpu: 0.0.40
codegen_flags: <defaults>
</compile_context>

<pallas_src>
import jax
import jax.numpy as jnp
from jax.experimental import pallas as pl
from jax.experimental.pallas import tpu as pltpu

_LANE = 128
_SUBLANE = 8


def _round_up(n, m):
    return ((n + m - 1) // m) * m


# ---------------------------------------------------------------------------
# Kernel: one batch tile of the fused 3-layer binarized MLP.
# Weights are pre-binarized (sign(W).T), zero-padded, and VMEM-resident;
# only the x / z tiles stream with the grid.
# ---------------------------------------------------------------------------
def mlp_ste_kernel(x_ref, w1_ref, b1_ref, w2_ref, b2_ref, wo_ref, bo_ref, z_ref):
    h = x_ref[...]  # bf16 (TB, in_p)

    a1 = jnp.dot(h, w1_ref[...], preferred_element_type=jnp.float32) + b1_ref[...]
    h1 = jnp.tanh(a1).astype(jnp.bfloat16)       # f32 tanh: correct on v5e too

    a2 = jnp.dot(h1, w2_ref[...], preferred_element_type=jnp.float32) + b2_ref[...]
    h2 = jnp.tanh(a2).astype(jnp.bfloat16)

    z = jnp.dot(h2, wo_ref[...], preferred_element_type=jnp.float32) + bo_ref[...]
    z_ref[...] = z.astype(z_ref.dtype)


# ---------------------------------------------------------------------------
# Generation-aware VMEM policy.
# ---------------------------------------------------------------------------
def _vmem_budget_bytes():
    """Usable VMEM budget, leaving headroom for compiler internal scratch."""
    cap = 64 * 1024 * 1024  # conservative fallback (v7x per-TC physical VMEM)
    try:
        info = pltpu.get_tpu_info()
        cap = int(getattr(info, "vmem_capacity_bytes", cap))
    except Exception:
        pass
    if cap >= 128 * 1024 * 1024:       # v5e / v6e: 128 MiB physical
        return 100 * 1024 * 1024
    if cap >= 64 * 1024 * 1024:        # v7x: 64 MiB physical
        return 52 * 1024 * 1024
    return max(cap - 4 * 1024 * 1024, 8 * 1024 * 1024)


def _vmem_use_bytes(tb, in_p, h1_p, h2_p, out_p, out_bytes):
    # Pallas double-buffers *every* input/output spec, including grid-invariant
    # ("resident") weight/bias blocks, so count those x2 as well.
    resident = 2 * ((in_p * h1_p + h1_p * h2_p + h2_p * out_p) * 2   # bf16 weights
                    + (h1_p + h2_p + out_p) * 4)                     # f32 biases
    streamed = 2 * tb * in_p * 2 + 2 * tb * out_p * out_bytes        # x / z tiles
    activ = tb * (h1_p + h2_p) * (4 + 2) + tb * out_p * 4            # f32 + bf16 temps
    return resident + streamed + activ


def _pick_batch_tile(batch_rows, in_p, h1_p, h2_p, out_p, out_bytes,
                     vmem_budget, batch_tile):
    # Start big (amortize per-grid-step overhead), shrink to fit VMEM budget.
    want = 1024 if batch_tile is None else batch_tile
    tb = min(_round_up(want, _SUBLANE), _round_up(batch_rows, _SUBLANE))
    headroom = 2 * 1024 * 1024
    while (tb > _SUBLANE
           and _vmem_use_bytes(tb, in_p, h1_p, h2_p, out_p, out_bytes)
           + headroom > vmem_budget):
        tb = max(_SUBLANE, _round_up(tb // 2, _SUBLANE))
    # Keep >= 2 grid steps when the batch allows it, so the "parallel" batch
    # axis can be sharded across v7x's two TensorCores (no-op on v5e/v6e).
    if tb >= batch_rows and batch_rows >= 2 * _SUBLANE:
        tb = _round_up((batch_rows + 1) // 2, _SUBLANE)
    return tb


# ---------------------------------------------------------------------------
# Hoisted, cacheable parameter preprocessing (do once per parameter set).
# ---------------------------------------------------------------------------
def prepare_mlp_ste_params(params, input_size):
    """sign(W).T once, zero-pad feature dims to lane multiples, bf16 cast."""
    (w1, b1), (w2, b2), (wo, bo) = params
    h1_sz, h2_sz, out_sz = w1.shape[0], w2.shape[0], wo.shape[0]

    in_p = _round_up(input_size, _LANE)
    h1_p = _round_up(h1_sz, _LANE)
    h2_p = _round_up(h2_sz, _LANE)
    out_p = _round_up(out_sz, _LANE)

    def prep_w(w, in_d, in_pd, out_d, out_pd):
        # torch.sign semantics: sign(0) == 0; +-1/0 are exact in bf16.
        ws = jnp.sign(w).T.astype(jnp.bfloat16)
        return jnp.pad(ws, ((0, in_pd - in_d), (0, out_pd - out_d)))

    def prep_b(b, out_d, out_pd):
        return jnp.pad(b.astype(jnp.float32).reshape(1, -1),
                       ((0, 0), (0, out_pd - out_d)))

    return dict(
        w1=prep_w(w1, input_size, in_p, h1_sz, h1_p), b1=prep_b(b1, h1_sz, h1_p),
        w2=prep_w(w2, h1_sz, h1_p, h2_sz, h2_p),      b2=prep_b(b2, h2_sz, h2_p),
        wo=prep_w(wo, h2_sz, h2_p, out_sz, out_p),    bo=prep_b(bo, out_sz, out_p),
        dims=(input_size, in_p, h1_p, h2_p, out_sz, out_p),
    )


# ---------------------------------------------------------------------------
# Forward wrapper.
# ---------------------------------------------------------------------------
def mlp_ste_forward(x, params=None, input_size=None, *, prepared=None,
                    batch_tile=None, out_dtype=jnp.float32):
    """params = ((w1, b1), (w2, b2), (wo, bo)); w_i PyTorch-style (out, in).
    Pass `prepared=prepare_mlp_ste_params(...)` to skip per-call weight prep."""
    if prepared is None:
        prepared = prepare_mlp_ste_params(params, input_size)
    input_size, in_p, h1_p, h2_p, out_sz, out_p = prepared["dims"]

    x2d = x.reshape(-1, input_size).astype(jnp.float32)  # x.view(-1, input_size)
    batch = x2d.shape[0]
    batch_p = _round_up(batch, _SUBLANE)                  # sublane pad only

    out_bytes = jnp.dtype(out_dtype).itemsize
    vmem_budget = _vmem_budget_bytes()
    tb = _pick_batch_tile(batch_p, in_p, h1_p, h2_p, out_p, out_bytes,
                          vmem_budget, batch_tile)
    n_steps = pl.cdiv(batch_p, tb)                        # ragged last block OK

    xp = jnp.pad(x2d, ((0, batch_p - batch),
                       (0, in_p - input_size))).astype(jnp.bfloat16)

    # Resident (non-streamed) operands: block index constant across the grid.
    resident = lambda shape: pl.BlockSpec(shape, lambda i: (0, 0))

    in_specs = [
        pl.BlockSpec((tb, in_p), lambda i: (i, 0)),   # x tile (streamed)
        resident((in_p, h1_p)),                        # sign(W1).T
        resident((1, h1_p)),                           # b1
        resident((h1_p, h2_p)),                        # sign(W2).T
        resident((1, h2_p)),                           # b2
        resident((h2_p, out_p)),                       # sign(Wo).T
        resident((1, out_p)),                          # bo
    ]
    out_specs = pl.BlockSpec((tb, out_p), lambda i: (i, 0))

    work_rows = n_steps * tb
    cost = pl.CostEstimate(
        flops=2 * work_rows * (in_p * h1_p + h1_p * h2_p + h2_p * out_p),
        transcendentals=work_rows * (h1_p + h2_p),
        bytes_accessed=(
            xp.size * 2 + batch_p * out_p * out_bytes
            + (in_p * h1_p + h1_p * h2_p + h2_p * out_p) * 2
            + (h1_p + h2_p + out_p) * 4),
    )

    zp = pl.pallas_call(
        mlp_ste_kernel,
        out_shape=jax.ShapeDtypeStruct((batch_p, out_p), out_dtype),
        grid=(n_steps,),
        in_specs=in_specs,
        out_specs=out_specs,
        compiler_params=pltpu.CompilerParams(
            dimension_semantics=("parallel",),
            vmem_limit_bytes=int(vmem_budget),
        ),
        cost_estimate=cost,
    )(xp, prepared["w1"], prepared["b1"], prepared["w2"], prepared["b2"],
      prepared["wo"], prepared["bo"])

    return zp[:batch, :out_sz]


# ---------------------------------------------------------------------------
# References for the self-test.
# ---------------------------------------------------------------------------
def _reference_f32(x, params, input_size):
    """Exact module semantics in f32."""
    x2d = x.reshape(-1, input_size).astype(jnp.float32)
    (w1, b1), (w2, b2), (wo, bo) = params
    out = jnp.tanh(x2d @ jnp.sign(w1).T + b1)
    out = jnp.tanh(out @ jnp.sign(w2).T + b2)
    return out @ jnp.sign(wo).T + bo


def _reference_bf16(x, params, input_size):
    """Reference mimicking the kernel's bf16 MXU operand casts (tight check)."""
    x2d = x.reshape(-1, input_size).astype(jnp.float32)
    (w1, b1), (w2, b2), (wo, bo) = params

    def blin(h, w, b):
        return jnp.dot(h.astype(jnp.bfloat16),
                       jnp.sign(w).T.astype(jnp.bfloat16),
                       preferred_element_type=jnp.float32) + b

    h1 = jnp.tanh(blin(x2d, w1, b1))
    h2 = jnp.tanh(blin(h1, w2, b2))
    return blin(h2, wo, bo)


if __name__ == "__main__":
    input_size = 16
    hidden_sizes = [32, 32]
    output_size = 4

    key = jax.random.PRNGKey(0)
    k_x, k_w1, k_b1, k_w2, k_b2, k_wo, k_bo = jax.random.split(key, 7)

    # Higher-rank input to exercise x.view(-1, input_size): (2, 4, 16) -> (8, 16)
    x = jax.random.normal(k_x, (2, 4, input_size), dtype=jnp.float32)

    # Deterministic parameter init (PyTorch Linear shape convention: (out, in)).
    w1 = jax.random.normal(k_w1, (hidden_sizes[0], input_size), dtype=jnp.float32) * 0.1
    b1 = jax.random.normal(k_b1, (hidden_sizes[0],), dtype=jnp.float32) * 0.1
    w2 = jax.random.normal(k_w2, (hidden_sizes[1], hidden_sizes[0]), dtype=jnp.float32) * 0.1
    b2 = jax.random.normal(k_b2, (hidden_sizes[1],), dtype=jnp.float32) * 0.1
    wo = jax.random.normal(k_wo, (output_size, hidden_sizes[1]), dtype=jnp.float32) * 0.1
    bo = jax.random.normal(k_bo, (output_size,), dtype=jnp.float32) * 0.1

    params = ((w1, b1), (w2, b2), (wo, bo))

    # Hoisted, cacheable weight prep (do once, reuse across forwards).
    prepared = prepare_mlp_ste_params(params, input_size)

    z = mlp_ste_forward(x, prepared=prepared)
    z = jax.block_until_ready(z)

    assert z.shape == (8, output_size)

    # Tight check against a reference using the same bf16 MXU operand casts.
    z_bf16 = _reference_bf16(x, params, input_size)
    assert jnp.allclose(z, z_bf16, atol=1e-2, rtol=1e-2), "mismatch vs bf16 reference"

    # Looser check against the exact f32 module semantics (bf16 operand rounding).
    z_f32 = _reference_f32(x, params, input_size)
    assert jnp.allclose(z, z_f32, atol=1e-1, rtol=0.0), "mismatch vs f32 reference"

    print("KERNEL_OK")
</pallas_src>

<mosaic_0001>
module attributes {stable_mosaic.version = 11 : i64} {
  func.func @mlp_ste_kernel(%arg0: i32, %arg1: memref<8x128xbf16, #tpu.memory_space<vmem>>, %arg2: memref<128x128xbf16, #tpu.memory_space<vmem>>, %arg3: memref<1x128xf32, #tpu.memory_space<vmem>>, %arg4: memref<128x128xbf16, #tpu.memory_space<vmem>>, %arg5: memref<1x128xf32, #tpu.memory_space<vmem>>, %arg6: memref<128x128xbf16, #tpu.memory_space<vmem>>, %arg7: memref<1x128xf32, #tpu.memory_space<vmem>>, %arg8: memref<8x128xf32, #tpu.memory_space<vmem>>) attributes {dimension_semantics = [#tpu.dimension_semantics<parallel>], iteration_bounds = array<i64: 1>, scalar_prefetch = 0 : i64, scratch_operands = 0 : i64, tpu.core_type = #tpu.core_type<tc>, window_params = [{transform_indices = @transform_0, window_bounds = array<i64: 8, 128>}, {pipeline_mode = #tpu.pipeline_mode<synchronous>, transform_indices = @transform_1, window_bounds = array<i64: 128, 128>}, {pipeline_mode = #tpu.pipeline_mode<synchronous>, transform_indices = @transform_2, window_bounds = array<i64: 1, 128>}, {pipeline_mode = #tpu.pipeline_mode<synchronous>, transform_indices = @transform_3, window_bounds = array<i64: 128, 128>}, {pipeline_mode = #tpu.pipeline_mode<synchronous>, transform_indices = @transform_4, window_bounds = array<i64: 1, 128>}, {pipeline_mode = #tpu.pipeline_mode<synchronous>, transform_indices = @transform_5, window_bounds = array<i64: 128, 128>}, {pipeline_mode = #tpu.pipeline_mode<synchronous>, transform_indices = @transform_6, window_bounds = array<i64: 1, 128>}, {transform_indices = @transform_7, window_bounds = array<i64: 8, 128>}]} {
    %c0 = arith.constant 0 : index
    %c0_0 = arith.constant 0 : index
    %0 = vector.load %arg1[%c0, %c0_0] : memref<8x128xbf16, #tpu.memory_space<vmem>>, vector<8x128xbf16>
    %c0_1 = arith.constant 0 : index
    %c0_2 = arith.constant 0 : index
    %1 = vector.load %arg2[%c0_1, %c0_2] : memref<128x128xbf16, #tpu.memory_space<vmem>>, vector<128x128xbf16>
    %cst = arith.constant dense<0.000000e+00> : vector<8x128xf32>
    %2 = tpu.matmul %0, %1, %cst {dimension_numbers = #tpu.dot_dimension_numbers<[1], [0], [0], [1], [0, 0, 1, 1], [], []>} : vector<8x128xbf16>, vector<128x128xbf16>, vector<8x128xf32> -> vector<8x128xf32>
    %c0_3 = arith.constant 0 : index
    %c0_4 = arith.constant 0 : index
    %3 = vector.load %arg3[%c0_3, %c0_4] : memref<1x128xf32, #tpu.memory_space<vmem>>, vector<1x128xf32>
    %4 = vector.broadcast %3 : vector<1x128xf32> to vector<8x128xf32>
    %5 = arith.addf %2, %4 : vector<8x128xf32>
    %6 = math.tanh %5 : vector<8x128xf32>
    %7 = arith.truncf %6 : vector<8x128xf32> to vector<8x128xbf16>
    %c0_5 = arith.constant 0 : index
    %c0_6 = arith.constant 0 : index
    %8 = vector.load %arg4[%c0_5, %c0_6] : memref<128x128xbf16, #tpu.memory_space<vmem>>, vector<128x128xbf16>
    %cst_7 = arith.constant dense<0.000000e+00> : vector<8x128xf32>
    %9 = tpu.matmul %7, %8, %cst_7 {dimension_numbers = #tpu.dot_dimension_numbers<[1], [0], [0], [1], [0, 0, 1, 1], [], []>} : vector<8x128xbf16>, vector<128x128xbf16>, vector<8x128xf32> -> vector<8x128xf32>
    %c0_8 = arith.constant 0 : index
    %c0_9 = arith.constant 0 : index
    %10 = vector.load %arg5[%c0_8, %c0_9] : memref<1x128xf32, #tpu.memory_space<vmem>>, vector<1x128xf32>
    %11 = vector.broadcast %10 : vector<1x128xf32> to vector<8x128xf32>
    %12 = arith.addf %9, %11 : vector<8x128xf32>
    %13 = math.tanh %12 : vector<8x128xf32>
    %14 = arith.truncf %13 : vector<8x128xf32> to vector<8x128xbf16>
    %c0_10 = arith.constant 0 : index
    %c0_11 = arith.constant 0 : index
    %15 = vector.load %arg6[%c0_10, %c0_11] : memref<128x128xbf16, #tpu.memory_space<vmem>>, vector<128x128xbf16>
    %cst_12 = arith.constant dense<0.000000e+00> : vector<8x128xf32>
    %16 = tpu.matmul %14, %15, %cst_12 {dimension_numbers = #tpu.dot_dimension_numbers<[1], [0], [0], [1], [0, 0, 1, 1], [], []>} : vector<8x128xbf16>, vector<128x128xbf16>, vector<8x128xf32> -> vector<8x128xf32>
    %c0_13 = arith.constant 0 : index
    %c0_14 = arith.constant 0 : index
    %17 = vector.load %arg7[%c0_13, %c0_14] : memref<1x128xf32, #tpu.memory_space<vmem>>, vector<1x128xf32>
    %18 = vector.broadcast %17 : vector<1x128xf32> to vector<8x128xf32>
    %19 = arith.addf %16, %18 : vector<8x128xf32>
    %c0_15 = arith.constant 0 : index
    %c0_16 = arith.constant 0 : index
    %20 = vector.load %arg8[%c0_15, %c0_16] : memref<8x128xf32, #tpu.memory_space<vmem>>, vector<8x128xf32>
    tpu.vector_store %arg8[%c0_15, %c0_16], %19 {strides = array<i32>} : memref<8x128xf32, #tpu.memory_space<vmem>>, vector<8x128xf32>,
    return
  }
  func.func @transform_0(%arg0: i32) -> (i32, i32) {
    %c0_i32 = arith.constant 0 : i32
    %c0_i32_0 = arith.constant 0 : i32
    return %arg0, %c0_i32 : i32, i32
  }
  func.func @transform_1(%arg0: i32) -> (i32, i32) {
    %c0_i32 = arith.constant 0 : i32
    %c0_i32_0 = arith.constant 0 : i32
    %c0_i32_1 = arith.constant 0 : i32
    return %c0_i32, %c0_i32_0 : i32, i32
  }
  func.func @transform_2(%arg0: i32) -> (i32, i32) {
    %c0_i32 = arith.constant 0 : i32
    %c0_i32_0 = arith.constant 0 : i32
    %c0_i32_1 = arith.constant 0 : i32
    return %c0_i32, %c0_i32_0 : i32, i32
  }
  func.func @transform_3(%arg0: i32) -> (i32, i32) {
    %c0_i32 = arith.constant 0 : i32
    %c0_i32_0 = arith.constant 0 : i32
    %c0_i32_1 = arith.constant 0 : i32
    return %c0_i32, %c0_i32_0 : i32, i32
  }
  func.func @transform_4(%arg0: i32) -> (i32, i32) {
    %c0_i32 = arith.constant 0 : i32
    %c0_i32_0 = arith.constant 0 : i32
    %c0_i32_1 = arith.constant 0 : i32
    return %c0_i32, %c0_i32_0 : i32, i32
  }
  func.func @transform_5(%arg0: i32) -> (i32, i32) {
    %c0_i32 = arith.constant 0 : i32
    %c0_i32_0 = arith.constant 0 : i32
    %c0_i32_1 = arith.constant 0 : i32
    return %c0_i32, %c0_i32_0 : i32, i32
  }
  func.func @transform_6(%arg0: i32) -> (i32, i32) {
    %c0_i32 = arith.constant 0 : i32
    %c0_i32_0 = arith.constant 0 : i32
    %c0_i32_1 = arith.constant 0 : i32
    return %c0_i32, %c0_i32_0 : i32, i32
  }
  func.func @transform_7(%arg0: i32) -> (i32, i32) {
    %c0_i32 = arith.constant 0 : i32
    %c0_i32_0 = arith.constant 0 : i32
    return %arg0, %c0_i32 : i32, i32
  }
}

</mosaic_0001>

<bundles_post_ra>
// kernel: tpu_custom_call.1
= control target key start
LH: loop header
LB: loop body
LE: loop exit
PB: predicated region body
PF: predicated region fallthrough
CT: control target
= control target key end

     0   :  { %12 = vsyncpa [#allocation3], 0  ;;  %s808_s0 = inlined_call_operand.hbm [shape: bf16[8,128], index: 0, kind: input, shape index: {}]   ;;  %s809_s1 = inlined_call_operand.hbm [shape: bf16[128,128], index: 1, kind: input, shape index: {}]   ;;  %s810_s2 = inlined_call_operand.vmem [shape: f32[1,128], index: 2, kind: input, shape index: {}]   ;;  %s811_s3 = inlined_call_operand.hbm [shape: bf16[128,128], index: 3, kind: input, shape index: {}]   ;;  %s812_s4 = inlined_call_operand.vmem [shape: f32[1,128], index: 4, kind: input, shape index: {}]   ;;  %s813_s5 = inlined_call_operand.hbm [shape: bf16[128,128], index: 5, kind: input, shape index: {}]   ;;  %s814_s6 = inlined_call_operand.vmem [shape: f32[1,128], index: 6, kind: input, shape index: {}]   ;;  %s815_s7 = inlined_call_operand.hbm [shape: f32[8,128], index: 7, kind: output, shape index: {}]  }
   0x1   :  { %13 = vsyncpa [#allocation6], 0 }
   0x2   :  { %14 = vsyncpa [#allocation9], 0 }
   0x3   :  { %15 = vsyncpa [#allocation4], 0  ;;  %s696_s24 = smov [#allocation5]  }
   0x4   :  { %s31_s25 = sshll.u32 %s696_s24, 4  ;;  %s32_s25 = int_to_ptr.vmem [resolvable:$true] %s31_s25 }
   0x5   :  { %s596_s26 = scalar_lea.vmem %s32_s25, 1024  ;;  %p601_p1 = scmp.lt.s32.totalorder %s32_s25, %s32_s25 }
   0x6   :  { %p597_p0 = scmp.ne.s32.totalorder %s32_s25, %s596_s26  ;;  %p602_p2 = scmp.lt.s32.totalorder %s596_s26, %s596_s26 }
   0x8   :  { %p603_p3 = por %p602_p2, %p601_p1 }
   0xa   :  { %p604_p4 = pnand %p603_p3, %p597_p0 }
   0xc   :  { %607 = shalt.err (!%p604_p4)
}
   0xd   :  { %s697_s27 = smov 64   ;;  %s698_s28 = smov 4  }
   0xe   :  { %37 = dma.hbm_to_vmem [thread:$0]  %s809_s1, 1024, %s32_s25, [#allocation6], %s697_s27, %s697_s27, %s698_s28  }
   0xf   :  { %s699_s8 = smov [#allocation2]   ;;  %s700_s10 = smov [#allocation7]  }
  0x10   :  { %s22_s9 = sshll.u32 %s699_s8, 4  ;;  %s45_s11 = sshll.u32 %s700_s10, 4  ;;  %s23_s9 = int_to_ptr.vmem [resolvable:$true] %s22_s9  ;;  %s46_s11 = int_to_ptr.vmem [resolvable:$true] %s45_s11 }
  0x11   :  { %s616_s12 = scalar_lea.vmem %s23_s9, 64  ;;  %p621_p6 = scmp.lt.s32.totalorder %s23_s9, %s23_s9 }
  0x12   :  { %p617_p5 = scmp.ne.s32.totalorder %s23_s9, %s616_s12  ;;  %p622_p7 = scmp.lt.s32.totalorder %s616_s12, %s616_s12 }
  0x14   :  { %p623_p8 = por %p622_p7, %p621_p6 }
  0x16   :  { %p624_p9 = pnand %p623_p8, %p617_p5 }
  0x18   :  { %627 = shalt.err (!%p624_p9)
}
  0x19   :  { %25 = dma.hbm_to_vmem [thread:$0]  %s808_s0, 64, %s23_s9, [#allocation3]  }
  0x1a   :  { %s636_s15 = scalar_lea.vmem %s46_s11, 1024  ;;  %p641_p11 = scmp.lt.s32.totalorder %s46_s11, %s46_s11 }
  0x1b   :  { %p637_p10 = scmp.ne.s32.totalorder %s46_s11, %s636_s15  ;;  %p642_p12 = scmp.lt.s32.totalorder %s636_s15, %s636_s15 }
  0x1d   :  { %p643_p13 = por %p642_p12, %p641_p11 }
  0x1f   :  { %p644_p0 = pnand %p643_p13, %p637_p10 }
  0x21   :  { %647 = shalt.err (!%p644_p0)
}
  0x22   :  { %51 = dma.hbm_to_vmem [thread:$0]  %s811_s3, 1024, %s46_s11, [#allocation6], %s697_s27, %s697_s27, %s698_s28  }
  0x23   :  { %s701_s17 = smov [#allocation8]  }
  0x24   :  { %s59_s18 = sshll.u32 %s701_s17, 4  ;;  %s60_s18 = int_to_ptr.vmem [resolvable:$true] %s59_s18 }
  0x25   :  { %s656_s19 = scalar_lea.vmem %s60_s18, 1024  ;;  %p661_p2 = scmp.lt.s32.totalorder %s60_s18, %s60_s18 }
  0x26   :  { %p657_p1 = scmp.ne.s32.totalorder %s60_s18, %s656_s19  ;;  %p662_p3 = scmp.lt.s32.totalorder %s656_s19, %s656_s19 }
  0x28   :  { %p663_p4 = por %p662_p3, %p661_p2 }
  0x2a   :  { %p664_p5 = pnand %p663_p4, %p657_p1 }
  0x2c   :  { %667 = shalt.err (!%p664_p5)
}
  0x2d   :  { %65 = dma.hbm_to_vmem [thread:$0]  %s813_s5, 1024, %s60_s18, [#allocation9], %s697_s27, %s697_s27, %s698_s28  }
  0x2e   :  { %688 = dma.done.wait [#allocation3], 64  }
  0x2f   :  { %689 = vsyncadd [#allocation3], 4294967232 }
  0x30   :  { %690 = dma.done.wait [#allocation6], 2048  }
  0x31   :  { %691 = vsyncadd [#allocation6], 4294965248 }
  0x32   :  { %692 = dma.done.wait [#allocation9], 1024  }
  0x33   :  { %693 = vsyncadd [#allocation9], 4294966272  ;;  %v702_v0 = vmov 0.0   ;;  %vm703_vm0 = vmmov 0   ;;  %v560_v1 = vld [vmem:[#allocation5 + $0x38] sm:$0xff]   ;;  %v561_v2 = vld [vmem:[#allocation5 + $0x30] sm:$0xff]  }
  0x34   :  { %491 = vmatprep.subr.bf16.mxu0 %v702_v0  ;;  %507 = vmatprep.mubr.msk.bf16.mxu0 %vm703_vm0, %v702_v0  ;;  %v562_v3 = vld [vmem:[#allocation5 + $0x28] sm:$0xff]   ;;  %v568_v4 = vld [vmem:[#allocation7 + $0x38] sm:$0xff]   ;;  %v563_v5 = vld [vmem:[#allocation5 + $0x20] sm:$0xff]   ;;  %s704_s24 = smov [#allocation10]  }
  0x35   :  { %511 = vmatprep.subr.bf16.mxu1 %v702_v0  ;;  %527 = vmatprep.mubr.msk.bf16.mxu1 %vm703_vm0, %v702_v0  ;;  %v569_v6 = vld [vmem:[#allocation7 + $0x30] sm:$0xff]   ;;  %v564_v7 = vld [vmem:[#allocation5 + $0x18] sm:$0xff]   ;;  %v570_v8 = vld [vmem:[#allocation7 + $0x28] sm:$0xff]   ;;  %s426_s25 = sshll.u32 %s704_s24, 4  ;;  %s427_s25 = int_to_ptr.vmem [resolvable:$true] %s426_s25 }
  0x36   :  { %492 = vmatpush3.bf16.msra.mxu0 %v560_v1  ;;  %512 = vmatpush3.bf16.msra.mxu1 %v568_v4  ;;  %v565_v9 = vld [vmem:[#allocation5 + $0x10] sm:$0xff]   ;;  %v566_v10 = vld [vmem:[#allocation5 + $0x8] sm:$0xff]   ;;  %v567_v11 = vld [vmem:[#allocation5] sm:$0xff]   ;;  %p673_p7 = scmp.lt.s32.totalorder %s427_s25, %s427_s25 }
  0x37   :  { %493 = vmatprep.subr.bf16.mxu0 %v702_v0  ;;  %513 = vmatprep.subr.bf16.mxu1 %v702_v0  ;;  %v81_v12 = vld [vmem:[#allocation2] sm:$0xf]  ;;  %v571_v13 = vld [vmem:[#allocation7 + $0x20] sm:$0xff]   ;;  %v573_v15 = vld [vmem:[#allocation7 + $0x10] sm:$0xff]  }
  0x38   :  { %v572_v14 = vld [vmem:[#allocation7 + $0x18] sm:$0xff]   ;;  %v574_v16 = vld [vmem:[#allocation7 + $0x8] sm:$0xff]   ;;  %v575_v17 = vld [vmem:[#allocation7] sm:$0xff]  }
  0x39   :  { %v576_v18 = vld [vmem:[#allocation8 + $0x38] sm:$0xff]   ;;  %v577_v19 = vld [vmem:[#allocation8 + $0x30] sm:$0xff]   ;;  %v578_v20 = vld [vmem:[#allocation8 + $0x28] sm:$0xff]  }
  0x3a   :  { %494 = vmatpush3.bf16.msra.mxu0 %v561_v2  ;;  %514 = vmatpush3.bf16.msra.mxu1 %v569_v6  ;;  %v437_v21 = vld [vmem:[%s810_s2] ss:$0 sm:$0xff]  ;;  %v579_v29 = vld [vmem:[#allocation8 + $0x20] sm:$0xff]   ;;  %v581_v31 = vld [vmem:[#allocation8 + $0x10] sm:$0xff]  }
  0x3b   :  { %495 = vmatprep.subr.bf16.mxu0 %v702_v0  ;;  %515 = vmatprep.subr.bf16.mxu1 %v702_v0  ;;  %v580_v30 = vld [vmem:[#allocation8 + $0x18] sm:$0xff]   ;;  %v582_v32 = vld [vmem:[#allocation8 + $0x8] sm:$0xff]   ;;  %v583_v33 = vld [vmem:[#allocation8] sm:$0xff]  }
  0x3c   :  { %v446_v34 = vld [vmem:[%s812_s4] ss:$0 sm:$0xff]  ;;  %s668_s4 = scalar_lea.vmem %s427_s25, 128 }
  0x3d   :  { %v455_v42 = vld [vmem:[%s814_s6] ss:$0 sm:$0xff]  ;;  %p669_p6 = scmp.ne.s32.totalorder %s427_s25, %s668_s4  ;;  %p674_p8 = scmp.lt.s32.totalorder %s668_s4, %s668_s4 }
  0x3e   :  { %496 = vmatpush3.bf16.msra.mxu0 %v562_v3  ;;  %516 = vmatpush3.bf16.msra.mxu1 %v570_v8 }
  0x3f   :  { %497 = vmatprep.subr.bf16.mxu0 %v702_v0  ;;  %517 = vmatprep.subr.bf16.mxu1 %v702_v0  ;;  %p675_p9 = por %p674_p8, %p673_p7 }
  0x41   :  { %p676_p10 = pnand %p675_p9, %p669_p6 }
  0x42   :  { %498 = vmatpush3.bf16.msra.mxu0 %v563_v5  ;;  %518 = vmatpush3.bf16.msra.mxu1 %v571_v13 }
  0x43   :  { %499 = vmatprep.subr.bf16.mxu0 %v702_v0  ;;  %519 = vmatprep.subr.bf16.mxu1 %v702_v0 }
  0x46   :  { %500 = vmatpush3.bf16.msra.mxu0 %v564_v7  ;;  %520 = vmatpush3.bf16.msra.mxu1 %v572_v14 }
  0x47   :  { %501 = vmatprep.subr.bf16.mxu0 %v702_v0  ;;  %521 = vmatprep.subr.bf16.mxu1 %v702_v0 }
  0x4a   :  { %502 = vmatpush3.bf16.msra.mxu0 %v565_v9  ;;  %522 = vmatpush3.bf16.msra.mxu1 %v573_v15 }
  0x4b   :  { %503 = vmatprep.subr.bf16.mxu0 %v702_v0  ;;  %523 = vmatprep.subr.bf16.mxu1 %v702_v0 }
  0x4e   :  { %504 = vmatpush3.bf16.msra.mxu0 %v566_v10  ;;  %524 = vmatpush3.bf16.msra.mxu1 %v574_v16 }
  0x4f   :  { %505 = vmatprep.subr.bf16.mxu0 %v702_v0  ;;  %525 = vmatprep.subr.bf16.mxu1 %v702_v0 }
  0x52   :  { %506 = vmatpush3.bf16.msra.mxu0 %v567_v11  ;;  %526 = vmatpush3.bf16.msra.mxu1 %v575_v17 }
  0x53   :  { %531 = vmatprep.subr.bf16.mxu0 %v702_v0 }
  0x55   :  { %508 = vmatmul.mubr.bf16.vlgmr.msra.gmra.mxu0 %v81_v12 }
  0x56   :  { %547 = vmatprep.mubr.msk.bf16.mxu0 %vm703_vm0, %v702_v0  ;;  %532 = vmatpush3.bf16.msra.mxu0 %v576_v18 }
  0x57   :  { %533 = vmatprep.subr.bf16.mxu0 %v702_v0 }
  0x5a   :  { %534 = vmatpush3.bf16.msra.mxu0 %v577_v19 }
  0x5b   :  { %535 = vmatprep.subr.bf16.mxu0 %v702_v0 }
  0x5e   :  { %536 = vmatpush3.bf16.msra.mxu0 %v578_v20 }
  0x5f   :  { %537 = vmatprep.subr.bf16.mxu0 %v702_v0 }
  0x62   :  { %538 = vmatpush3.bf16.msra.mxu0 %v579_v29 }
  0x63   :  { %539 = vmatprep.subr.bf16.mxu0 %v702_v0 }
  0x66   :  { %540 = vmatpush3.bf16.msra.mxu0 %v580_v30 }
  0x67   :  { %541 = vmatprep.subr.bf16.mxu0 %v702_v0 }
  0x6a   :  { %542 = vmatpush3.bf16.msra.mxu0 %v581_v31 }
  0x6b   :  { %543 = vmatprep.subr.bf16.mxu0 %v702_v0 }
  0x6e   :  { %544 = vmatpush3.bf16.msra.mxu0 %v582_v32 }
  0x6f   :  { %545 = vmatprep.subr.bf16.mxu0 %v702_v0 }
  0x72   :  { %546 = vmatpush3.bf16.msra.mxu0 %v583_v33 }
 0x115   :  { %v187_v22 = vpop.f32.mrf.mxu0 }
 0x116   :  { %v188_v23 = vadd.f32 %v437_v21, %v187_v22 }
 0x117   :  { %v509_v24 = vpop.f32.mrf.mxu0 }
 0x118   :  { %584 = vtanh.f32 %v188_v23 }
 0x119   :  { %v190_v25 = vpop.f32.mrf.mxu0 }
 0x11b   :  { %v510_v26 = vpop.f32.mrf.mxu0 }
 0x125   :  { %v585_v27 = vpop.eup %584 }
 0x126   :  { %v194_v28 = vpack.c.bf16 %v585_v27, %v585_v27 }
 0x128   :  { %528 = vmatmul.mubr.bf16.vlgmr.msra.gmra.mxu1 %v194_v28 }
 0x1e8   :  { %v300_v35 = vpop.f32.mrf.mxu1 }
 0x1e9   :  { %v301_v36 = vadd.f32 %v446_v34, %v300_v35 }
 0x1ea   :  { %v529_v37 = vpop.f32.mrf.mxu1 }
 0x1eb   :  { %586 = vtanh.f32 %v301_v36 }
 0x1ec   :  { %v303_v38 = vpop.f32.mrf.mxu1 }
 0x1ee   :  { %v530_v39 = vpop.f32.mrf.mxu1 }
 0x1f8   :  { %v587_v40 = vpop.eup %586 }
 0x1f9   :  { %v307_v41 = vpack.c.bf16 %v587_v40, %v587_v40 }
 0x1fb   :  { %548 = vmatmul.mubr.bf16.vlgmr.msra.gmra.mxu0 %v307_v41 }
 0x2bb   :  { %v413_v43 = vpop.f32.mrf.mxu0 }
 0x2bc   :  { %v414_v44 = vadd.f32 %v455_v42, %v413_v43 }
 0x2bd   :  { %v549_v45 = vpop.f32.mrf.mxu0 }
 0x2be   :  { %419 = vst [vmem:[#allocation10] sm:$0xff] %v414_v44 }
 0x2bf   :  { %v416_v46 = vpop.f32.mrf.mxu0 }
 0x2c0   :  { %679 = shalt.err (!%p676_p10)
}
 0x2c1   :  { %429 = dma.vmem_to_hbm [thread:$0]  %s427_s25, 128, %s815_s7, [#allocation4]   ;;  %v550_v47 = vpop.f32.mrf.mxu0 }
 0x2c2   :  { %694 = dma.done.wait [#allocation4], 128  }
 0x2c3   :  { %695 = vsyncadd [#allocation4], 4294967168 }
 0x2c4   :  { %433 = vsyncpa [#allocation3], 1 }
 0x2c5   :  { %434 = vsyncpa [#allocation6], 1 }
 0x2c6   :  { %435 = vsyncpa [#allocation9], 1 }
 0x2c7   :  { %436 = vsyncpa [#allocation4], 1 }

</bundles_post_ra>
